<compile_context>
chip_gen: v5e
topology: v5e:2x2
jax: 0.10.0
libtpu: 0.0.40
codegen_flags: <defaults>
</compile_context>

<pallas_src>
import jax
import jax.numpy as jnp
import numpy as np
from jax.experimental import pallas as pl
from jax.experimental.pallas import tpu as pltpu

EPS = 1e-5


def _full_spec(shape):
    nd = len(shape)
    return pl.BlockSpec(shape, lambda *_, nd=nd: (0,) * nd)


def basic_block(x_nhwc, w1, g1, b1, w2, g2, b2):
    """BasicBlock forward. x_nhwc: (B,H,W,C) f32; w*: (3,3,C,C) HWIO; g*,b*: (C,)."""
    B, H, W, C = x_nhwc.shape
    assert w1.shape == (3, 3, C, C) and w2.shape == (3, 3, C, C), \
        "residual path requires planes == inplanes (stride=1, downsample=None)"
    R, L = B * H, W * C
    inv_n = 1.0 / float(B * H * W)

    # ---- host-side, one-time repacking of small structured constants ----
    # (in production these would be precomputed once per weight update)
    def band(w):
        """(3,3,Cin,Cout) HWIO -> (3, W*C, W*C) banded matrices (one per dy)
        fusing the dx taps + channel contraction into a K = W*C matmul."""
        w = np.asarray(w, np.float32)
        m = np.zeros((3, L, L), np.float32)
        for dyi in range(3):
            for wi in range(W):
                for dxi in range(3):
                    wo = wi - (dxi - 1)
                    if 0 <= wo < W:
                        m[dyi, wi * C:(wi + 1) * C, wo * C:(wo + 1) * C] = w[dyi, dxi]
        return jnp.asarray(m)

    def shift_mats():
        """(2, R, R): row shift + image-boundary mask for dy = -1 and dy = +1."""
        s = np.zeros((2, R, R), np.float32)
        for r in range(R):
            h = r % H
            if h - 1 >= 0:
                s[0, r, r - 1] = 1.0      # dy = -1: pull row r-1
            if h + 1 < H:
                s[1, r, r + 1] = 1.0      # dy = +1: pull row r+1
        return jnp.asarray(s)

    def chan_map():
        """(L, L) 0/1 matrix: sums the W lane-blocks of each channel and
        broadcasts the per-channel total back to all W positions in one matmul."""
        lane_c = np.arange(L) % C
        return jnp.asarray((lane_c[:, None] == lane_c[None, :]).astype(np.float32))

    def lanes(v):
        return jnp.asarray(np.tile(np.asarray(v, np.float32), W).reshape(1, L))

    x2d = x_nhwc.reshape(R, L)              # metadata-only reshape, lane-dense
    s_m = shift_mats()
    w1_m, w2_m = band(w1), band(w2)
    cmap = chan_map()
    g1_l, b1_l, g2_l, b2_l = lanes(g1), lanes(b1), lanes(g2), lanes(b2)

    def kernel(x_ref, s_ref, w1_ref, w2_ref, m_ref,
               g1_ref, b1_ref, g2_ref, b2_ref, o_ref):

        def conv3x3(y, w_ref):
            # dy row shifts (with boundary masking) as tiny MXU matmuls.
            up = jnp.dot(s_ref[0], y, preferred_element_type=jnp.float32)
            dn = jnp.dot(s_ref[1], y, preferred_element_type=jnp.float32)
            # dx taps + channel contraction fused: K = W*C per matmul.
            acc = jnp.dot(up, w_ref[0], preferred_element_type=jnp.float32)
            acc = acc + jnp.dot(y, w_ref[1], preferred_element_type=jnp.float32)
            acc = acc + jnp.dot(dn, w_ref[2], preferred_element_type=jnp.float32)
            return acc

        def batchnorm(y, g_ref, b_ref):
            # training-mode BN: batch mean / biased variance over (N, H, W),
            # single sweep (sum and sum-of-squares together).
            col_s = jnp.sum(y, axis=0, keepdims=True)        # (1, L)
            col_q = jnp.sum(y * y, axis=0, keepdims=True)    # (1, L)
            tot_s = jnp.dot(col_s, m_ref[...], preferred_element_type=jnp.float32)
            tot_q = jnp.dot(col_q, m_ref[...], preferred_element_type=jnp.float32)
            mean = tot_s * inv_n
            var = tot_q * inv_n - mean * mean
            scale = jax.lax.rsqrt(var + EPS) * g_ref[...]
            return (y - mean) * scale + b_ref[...]

        out = conv3x3(x_ref[...], w1_ref)                          # conv1
        out = jnp.maximum(batchnorm(out, g1_ref, b1_ref), 0.0)     # bn1 + relu
        out = conv3x3(out, w2_ref)                                 # conv2
        out = batchnorm(out, g2_ref, b2_ref)                       # bn2
        out = jnp.maximum(out + x_ref[...], 0.0)                   # residual + relu
        o_ref[...] = out.astype(o_ref.dtype)

    args = (x2d, s_m, w1_m, w2_m, cmap, g1_l, b1_l, g2_l, b2_l)
    out2d = pl.pallas_call(
        kernel,
        out_shape=jax.ShapeDtypeStruct((R, L), x_nhwc.dtype),
        grid=(1,),
        in_specs=[_full_spec(a.shape) for a in args],
        out_specs=_full_spec((R, L)),
        compiler_params=pltpu.CompilerParams(dimension_semantics=("arbitrary",)),
    )(*args)
    return out2d.reshape(B, H, W, C)


def reference_forward(x_nhwc, w1, g1, b1, w2, g2, b2):
    dn = jax.lax.conv_dimension_numbers(x_nhwc.shape, w1.shape,
                                        ('NHWC', 'HWIO', 'NHWC'))

    def conv(inp, w):
        return jax.lax.conv_general_dilated(inp, w, (1, 1),
                                            ((1, 1), (1, 1)),
                                            dimension_numbers=dn)

    def bn(y, g, b):
        m = jnp.mean(y, axis=(0, 1, 2), keepdims=True)
        v = jnp.mean((y - m) ** 2, axis=(0, 1, 2), keepdims=True)
        return (y - m) * jax.lax.rsqrt(v + EPS) * g.reshape(1, 1, 1, -1) \
            + b.reshape(1, 1, 1, -1)

    out = jax.nn.relu(bn(conv(x_nhwc, w1), g1, b1))
    out = bn(conv(out, w2), g2, b2)
    return jax.nn.relu(out + x_nhwc)


if __name__ == "__main__":
    # BasicBlock(inplanes=16, planes=16, stride=1, downsample=None)
    B, C, H, W = 2, 16, 8, 8          # W*C = 128 -> fully lane-dense slabs

    key = jax.random.PRNGKey(0)
    kx, k1, k2, k3, k4, k5, k6 = jax.random.split(key, 7)

    x_nchw = jax.random.normal(kx, (B, C, H, W), jnp.float32)   # PyTorch NCHW
    x_nhwc = jnp.transpose(x_nchw, (0, 2, 3, 1))                # kernel NHWC

    # conv weights, HWIO (kh, kw, cin, cout), bias=False
    w1 = 0.1 * jax.random.normal(k1, (3, 3, C, C), jnp.float32)
    w2 = 0.1 * jax.random.normal(k2, (3, 3, C, C), jnp.float32)
    # BN affine params
    g1 = 1.0 + 0.1 * jax.random.normal(k3, (C,), jnp.float32)
    b1 = 0.1 * jax.random.normal(k4, (C,), jnp.float32)
    g2 = 1.0 + 0.1 * jax.random.normal(k5, (C,), jnp.float32)
    b2 = 0.1 * jax.random.normal(k6, (C,), jnp.float32)

    out = basic_block(x_nhwc, w1, g1, b1, w2, g2, b2)
    out = jax.block_until_ready(out)

    ref = reference_forward(x_nhwc, w1, g1, b1, w2, g2, b2)
    np.testing.assert_allclose(np.asarray(out), np.asarray(ref),
                               rtol=5e-2, atol=5e-2)
    print("KERNEL_OK")
</pallas_src>

<mosaic_0001>
module attributes {stable_mosaic.version = 11 : i64} {
  func.func @kernel(%arg0: i32, %arg1: memref<16x128xf32, #tpu.memory_space<vmem>>, %arg2: memref<2x16x16xf32, #tpu.memory_space<vmem>>, %arg3: memref<3x128x128xf32, #tpu.memory_space<vmem>>, %arg4: memref<3x128x128xf32, #tpu.memory_space<vmem>>, %arg5: memref<128x128xf32, #tpu.memory_space<vmem>>, %arg6: memref<1x128xf32, #tpu.memory_space<vmem>>, %arg7: memref<1x128xf32, #tpu.memory_space<vmem>>, %arg8: memref<1x128xf32, #tpu.memory_space<vmem>>, %arg9: memref<1x128xf32, #tpu.memory_space<vmem>>, %arg10: memref<16x128xf32, #tpu.memory_space<vmem>>) attributes {dimension_semantics = [#tpu.dimension_semantics<arbitrary>], iteration_bounds = array<i64: 1>, scalar_prefetch = 0 : i64, scratch_operands = 0 : i64, tpu.core_type = #tpu.core_type<tc>, window_params = [{pipeline_mode = #tpu.pipeline_mode<synchronous>, transform_indices = @transform_0, window_bounds = array<i64: 16, 128>}, {pipeline_mode = #tpu.pipeline_mode<synchronous>, transform_indices = @transform_1, window_bounds = array<i64: 2, 16, 16>}, {pipeline_mode = #tpu.pipeline_mode<synchronous>, transform_indices = @transform_2, window_bounds = array<i64: 3, 128, 128>}, {pipeline_mode = #tpu.pipeline_mode<synchronous>, transform_indices = @transform_3, window_bounds = array<i64: 3, 128, 128>}, {pipeline_mode = #tpu.pipeline_mode<synchronous>, transform_indices = @transform_4, window_bounds = array<i64: 128, 128>}, {pipeline_mode = #tpu.pipeline_mode<synchronous>, transform_indices = @transform_5, window_bounds = array<i64: 1, 128>}, {pipeline_mode = #tpu.pipeline_mode<synchronous>, transform_indices = @transform_6, window_bounds = array<i64: 1, 128>}, {pipeline_mode = #tpu.pipeline_mode<synchronous>, transform_indices = @transform_7, window_bounds = array<i64: 1, 128>}, {pipeline_mode = #tpu.pipeline_mode<synchronous>, transform_indices = @transform_8, window_bounds = array<i64: 1, 128>}, {pipeline_mode = #tpu.pipeline_mode<synchronous>, transform_indices = @transform_9, window_bounds = array<i64: 16, 128>}]} {
    %c0 = arith.constant 0 : index
    %c0_0 = arith.constant 0 : index
    %0 = vector.load %arg1[%c0, %c0_0] : memref<16x128xf32, #tpu.memory_space<vmem>>, vector<16x128xf32>
    %c0_1 = arith.constant 0 : index
    %c0_2 = arith.constant 0 : index
    %c0_3 = arith.constant 0 : index
    %1 = vector.load %arg2[%c0_1, %c0_2, %c0_3] : memref<2x16x16xf32, #tpu.memory_space<vmem>>, vector<1x16x16xf32>
    %2 = vector.shape_cast %1 : vector<1x16x16xf32> to vector<16x16xf32>
    %cst = arith.constant dense<0.000000e+00> : vector<16x128xf32>
    %3 = tpu.matmul %2, %0, %cst {dimension_numbers = #tpu.dot_dimension_numbers<[1], [0], [0], [1], [0, 0, 1, 1], [], []>} : vector<16x16xf32>, vector<16x128xf32>, vector<16x128xf32> -> vector<16x128xf32>
    %c1 = arith.constant 1 : index
    %c0_4 = arith.constant 0 : index
    %c0_5 = arith.constant 0 : index
    %4 = vector.load %arg2[%c1, %c0_4, %c0_5] : memref<2x16x16xf32, #tpu.memory_space<vmem>>, vector<1x16x16xf32>
    %5 = vector.shape_cast %4 : vector<1x16x16xf32> to vector<16x16xf32>
    %cst_6 = arith.constant dense<0.000000e+00> : vector<16x128xf32>
    %6 = tpu.matmul %5, %0, %cst_6 {dimension_numbers = #tpu.dot_dimension_numbers<[1], [0], [0], [1], [0, 0, 1, 1], [], []>} : vector<16x16xf32>, vector<16x128xf32>, vector<16x128xf32> -> vector<16x128xf32>
    %c0_7 = arith.constant 0 : index
    %c0_8 = arith.constant 0 : index
    %c0_9 = arith.constant 0 : index
    %7 = vector.load %arg3[%c0_7, %c0_8, %c0_9] : memref<3x128x128xf32, #tpu.memory_space<vmem>>, vector<1x128x128xf32>
    %8 = vector.shape_cast %7 : vector<1x128x128xf32> to vector<128x128xf32>
    %cst_10 = arith.constant dense<0.000000e+00> : vector<16x128xf32>
    %9 = tpu.matmul %3, %8, %cst_10 {dimension_numbers = #tpu.dot_dimension_numbers<[1], [0], [0], [1], [0, 0, 1, 1], [], []>} : vector<16x128xf32>, vector<128x128xf32>, vector<16x128xf32> -> vector<16x128xf32>
    %c1_11 = arith.constant 1 : index
    %c0_12 = arith.constant 0 : index
    %c0_13 = arith.constant 0 : index
    %10 = vector.load %arg3[%c1_11, %c0_12, %c0_13] : memref<3x128x128xf32, #tpu.memory_space<vmem>>, vector<1x128x128xf32>
    %11 = vector.shape_cast %10 : vector<1x128x128xf32> to vector<128x128xf32>
    %cst_14 = arith.constant dense<0.000000e+00> : vector<16x128xf32>
    %12 = tpu.matmul %0, %11, %cst_14 {dimension_numbers = #tpu.dot_dimension_numbers<[1], [0], [0], [1], [0, 0, 1, 1], [], []>} : vector<16x128xf32>, vector<128x128xf32>, vector<16x128xf32> -> vector<16x128xf32>
    %13 = arith.addf %9, %12 : vector<16x128xf32>
    %c2 = arith.constant 2 : index
    %c0_15 = arith.constant 0 : index
    %c0_16 = arith.constant 0 : index
    %14 = vector.load %arg3[%c2, %c0_15, %c0_16] : memref<3x128x128xf32, #tpu.memory_space<vmem>>, vector<1x128x128xf32>
    %15 = vector.shape_cast %14 : vector<1x128x128xf32> to vector<128x128xf32>
    %cst_17 = arith.constant dense<0.000000e+00> : vector<16x128xf32>
    %16 = tpu.matmul %6, %15, %cst_17 {dimension_numbers = #tpu.dot_dimension_numbers<[1], [0], [0], [1], [0, 0, 1, 1], [], []>} : vector<16x128xf32>, vector<128x128xf32>, vector<16x128xf32> -> vector<16x128xf32>
    %17 = arith.addf %13, %16 : vector<16x128xf32>
    %cst_18 = arith.constant dense<0.000000e+00> : vector<128xf32>
    %18 = vector.multi_reduction <add>, %17, %cst_18 [0] : vector<16x128xf32> to vector<128xf32>
    %19 = vector.shape_cast %18 : vector<128xf32> to vector<1x128xf32>
    %20 = arith.mulf %17, %17 : vector<16x128xf32>
    %cst_19 = arith.constant dense<0.000000e+00> : vector<128xf32>
    %21 = vector.multi_reduction <add>, %20, %cst_19 [0] : vector<16x128xf32> to vector<128xf32>
    %22 = vector.shape_cast %21 : vector<128xf32> to vector<1x128xf32>
    %c0_20 = arith.constant 0 : index
    %c0_21 = arith.constant 0 : index
    %23 = vector.load %arg5[%c0_20, %c0_21] : memref<128x128xf32, #tpu.memory_space<vmem>>, vector<128x128xf32>
    %cst_22 = arith.constant dense<0.000000e+00> : vector<1x128xf32>
    %24 = tpu.matmul %19, %23, %cst_22 {dimension_numbers = #tpu.dot_dimension_numbers<[1], [0], [0], [1], [0, 0, 1, 1], [], []>} : vector<1x128xf32>, vector<128x128xf32>, vector<1x128xf32> -> vector<1x128xf32>
    %c0_23 = arith.constant 0 : index
    %c0_24 = arith.constant 0 : index
    %25 = vector.load %arg5[%c0_23, %c0_24] : memref<128x128xf32, #tpu.memory_space<vmem>>, vector<128x128xf32>
    %cst_25 = arith.constant dense<0.000000e+00> : vector<1x128xf32>
    %26 = tpu.matmul %22, %25, %cst_25 {dimension_numbers = #tpu.dot_dimension_numbers<[1], [0], [0], [1], [0, 0, 1, 1], [], []>} : vector<1x128xf32>, vector<128x128xf32>, vector<1x128xf32> -> vector<1x128xf32>
    %cst_26 = arith.constant 7.812500e-03 : f32
    %27 = vector.broadcast %cst_26 : f32 to vector<1x128xf32>
    %28 = arith.mulf %24, %27 : vector<1x128xf32>
    %cst_27 = arith.constant 7.812500e-03 : f32
    %29 = vector.broadcast %cst_27 : f32 to vector<1x128xf32>
    %30 = arith.mulf %26, %29 : vector<1x128xf32>
    %31 = arith.mulf %28, %28 : vector<1x128xf32>
    %32 = arith.subf %30, %31 : vector<1x128xf32>
    %cst_28 = arith.constant 9.99999974E-6 : f32
    %33 = vector.broadcast %cst_28 : f32 to vector<1x128xf32>
    %34 = arith.addf %32, %33 : vector<1x128xf32>
    %35 = math.rsqrt %34 : vector<1x128xf32>
    %c0_29 = arith.constant 0 : index
    %c0_30 = arith.constant 0 : index
    %36 = vector.load %arg6[%c0_29, %c0_30] : memref<1x128xf32, #tpu.memory_space<vmem>>, vector<1x128xf32>
    %37 = arith.mulf %35, %36 : vector<1x128xf32>
    %38 = vector.broadcast %28 : vector<1x128xf32> to vector<16x128xf32>
    %39 = arith.subf %17, %38 : vector<16x128xf32>
    %40 = vector.broadcast %37 : vector<1x128xf32> to vector<16x128xf32>
    %41 = arith.mulf %39, %40 : vector<16x128xf32>
    %c0_31 = arith.constant 0 : index
    %c0_32 = arith.constant 0 : index
    %42 = vector.load %arg7[%c0_31, %c0_32] : memref<1x128xf32, #tpu.memory_space<vmem>>, vector<1x128xf32>
    %43 = vector.broadcast %42 : vector<1x128xf32> to vector<16x128xf32>
    %44 = arith.addf %41, %43 : vector<16x128xf32>
    %cst_33 = arith.constant 0.000000e+00 : f32
    %45 = vector.broadcast %cst_33 : f32 to vector<16x128xf32>
    %46 = arith.maximumf %44, %45 : vector<16x128xf32>
    %c0_34 = arith.constant 0 : index
    %c0_35 = arith.constant 0 : index
    %c0_36 = arith.constant 0 : index
    %47 = vector.load %arg2[%c0_34, %c0_35, %c0_36] : memref<2x16x16xf32, #tpu.memory_space<vmem>>, vector<1x16x16xf32>
    %48 = vector.shape_cast %47 : vector<1x16x16xf32> to vector<16x16xf32>
    %cst_37 = arith.constant dense<0.000000e+00> : vector<16x128xf32>
    %49 = tpu.matmul %48, %46, %cst_37 {dimension_numbers = #tpu.dot_dimension_numbers<[1], [0], [0], [1], [0, 0, 1, 1], [], []>} : vector<16x16xf32>, vector<16x128xf32>, vector<16x128xf32> -> vector<16x128xf32>
    %c1_38 = arith.constant 1 : index
    %c0_39 = arith.constant 0 : index
    %c0_40 = arith.constant 0 : index
    %50 = vector.load %arg2[%c1_38, %c0_39, %c0_40] : memref<2x16x16xf32, #tpu.memory_space<vmem>>, vector<1x16x16xf32>
    %51 = vector.shape_cast %50 : vector<1x16x16xf32> to vector<16x16xf32>
    %cst_41 = arith.constant dense<0.000000e+00> : vector<16x128xf32>
    %52 = tpu.matmul %51, %46, %cst_41 {dimension_numbers = #tpu.dot_dimension_numbers<[1], [0], [0], [1], [0, 0, 1, 1], [], []>} : vector<16x16xf32>, vector<16x128xf32>, vector<16x128xf32> -> vector<16x128xf32>
    %c0_42 = arith.constant 0 : index
    %c0_43 = arith.constant 0 : index
    %c0_44 = arith.constant 0 : index
    %53 = vector.load %arg4[%c0_42, %c0_43, %c0_44] : memref<3x128x128xf32, #tpu.memory_space<vmem>>, vector<1x128x128xf32>
    %54 = vector.shape_cast %53 : vector<1x128x128xf32> to vector<128x128xf32>
    %cst_45 = arith.constant dense<0.000000e+00> : vector<16x128xf32>
    %55 = tpu.matmul %49, %54, %cst_45 {dimension_numbers = #tpu.dot_dimension_numbers<[1], [0], [0], [1], [0, 0, 1, 1], [], []>} : vector<16x128xf32>, vector<128x128xf32>, vector<16x128xf32> -> vector<16x128xf32>
    %c1_46 = arith.constant 1 : index
    %c0_47 = arith.constant 0 : index
    %c0_48 = arith.constant 0 : index
    %56 = vector.load %arg4[%c1_46, %c0_47, %c0_48] : memref<3x128x128xf32, #tpu.memory_space<vmem>>, vector<1x128x128xf32>
    %57 = vector.shape_cast %56 : vector<1x128x128xf32> to vector<128x128xf32>
    %cst_49 = arith.constant dense<0.000000e+00> : vector<16x128xf32>
    %58 = tpu.matmul %46, %57, %cst_49 {dimension_numbers = #tpu.dot_dimension_numbers<[1], [0], [0], [1], [0, 0, 1, 1], [], []>} : vector<16x128xf32>, vector<128x128xf32>, vector<16x128xf32> -> vector<16x128xf32>
    %59 = arith.addf %55, %58 : vector<16x128xf32>
    %c2_50 = arith.constant 2 : index
    %c0_51 = arith.constant 0 : index
    %c0_52 = arith.constant 0 : index
    %60 = vector.load %arg4[%c2_50, %c0_51, %c0_52] : memref<3x128x128xf32, #tpu.memory_space<vmem>>, vector<1x128x128xf32>
    %61 = vector.shape_cast %60 : vector<1x128x128xf32> to vector<128x128xf32>
    %cst_53 = arith.constant dense<0.000000e+00> : vector<16x128xf32>
    %62 = tpu.matmul %52, %61, %cst_53 {dimension_numbers = #tpu.dot_dimension_numbers<[1], [0], [0], [1], [0, 0, 1, 1], [], []>} : vector<16x128xf32>, vector<128x128xf32>, vector<16x128xf32> -> vector<16x128xf32>
    %63 = arith.addf %59, %62 : vector<16x128xf32>
    %cst_54 = arith.constant dense<0.000000e+00> : vector<128xf32>
    %64 = vector.multi_reduction <add>, %63, %cst_54 [0] : vector<16x128xf32> to vector<128xf32>
    %65 = vector.shape_cast %64 : vector<128xf32> to vector<1x128xf32>
    %66 = arith.mulf %63, %63 : vector<16x128xf32>
    %cst_55 = arith.constant dense<0.000000e+00> : vector<128xf32>
    %67 = vector.multi_reduction <add>, %66, %cst_55 [0] : vector<16x128xf32> to vector<128xf32>
    %68 = vector.shape_cast %67 : vector<128xf32> to vector<1x128xf32>
    %c0_56 = arith.constant 0 : index
    %c0_57 = arith.constant 0 : index
    %69 = vector.load %arg5[%c0_56, %c0_57] : memref<128x128xf32, #tpu.memory_space<vmem>>, vector<128x128xf32>
    %cst_58 = arith.constant dense<0.000000e+00> : vector<1x128xf32>
    %70 = tpu.matmul %65, %69, %cst_58 {dimension_numbers = #tpu.dot_dimension_numbers<[1], [0], [0], [1], [0, 0, 1, 1], [], []>} : vector<1x128xf32>, vector<128x128xf32>, vector<1x128xf32> -> vector<1x128xf32>
    %c0_59 = arith.constant 0 : index
    %c0_60 = arith.constant 0 : index
    %71 = vector.load %arg5[%c0_59, %c0_60] : memref<128x128xf32, #tpu.memory_space<vmem>>, vector<128x128xf32>
    %cst_61 = arith.constant dense<0.000000e+00> : vector<1x128xf32>
    %72 = tpu.matmul %68, %71, %cst_61 {dimension_numbers = #tpu.dot_dimension_numbers<[1], [0], [0], [1], [0, 0, 1, 1], [], []>} : vector<1x128xf32>, vector<128x128xf32>, vector<1x128xf32> -> vector<1x128xf32>
    %cst_62 = arith.constant 7.812500e-03 : f32
    %73 = vector.broadcast %cst_62 : f32 to vector<1x128xf32>
    %74 = arith.mulf %70, %73 : vector<1x128xf32>
    %cst_63 = arith.constant 7.812500e-03 : f32
    %75 = vector.broadcast %cst_63 : f32 to vector<1x128xf32>
    %76 = arith.mulf %72, %75 : vector<1x128xf32>
    %77 = arith.mulf %74, %74 : vector<1x128xf32>
    %78 = arith.subf %76, %77 : vector<1x128xf32>
    %cst_64 = arith.constant 9.99999974E-6 : f32
    %79 = vector.broadcast %cst_64 : f32 to vector<1x128xf32>
    %80 = arith.addf %78, %79 : vector<1x128xf32>
    %81 = math.rsqrt %80 : vector<1x128xf32>
    %c0_65 = arith.constant 0 : index
    %c0_66 = arith.constant 0 : index
    %82 = vector.load %arg8[%c0_65, %c0_66] : memref<1x128xf32, #tpu.memory_space<vmem>>, vector<1x128xf32>
    %83 = arith.mulf %81, %82 : vector<1x128xf32>
    %84 = vector.broadcast %74 : vector<1x128xf32> to vector<16x128xf32>
    %85 = arith.subf %63, %84 : vector<16x128xf32>
    %86 = vector.broadcast %83 : vector<1x128xf32> to vector<16x128xf32>
    %87 = arith.mulf %85, %86 : vector<16x128xf32>
    %c0_67 = arith.constant 0 : index
    %c0_68 = arith.constant 0 : index
    %88 = vector.load %arg9[%c0_67, %c0_68] : memref<1x128xf32, #tpu.memory_space<vmem>>, vector<1x128xf32>
    %89 = vector.broadcast %88 : vector<1x128xf32> to vector<16x128xf32>
    %90 = arith.addf %87, %89 : vector<16x128xf32>
    %c0_69 = arith.constant 0 : index
    %c0_70 = arith.constant 0 : index
    %91 = vector.load %arg1[%c0_69, %c0_70] : memref<16x128xf32, #tpu.memory_space<vmem>>, vector<16x128xf32>
    %92 = arith.addf %90, %91 : vector<16x128xf32>
    %cst_71 = arith.constant 0.000000e+00 : f32
    %93 = vector.broadcast %cst_71 : f32 to vector<16x128xf32>
    %94 = arith.maximumf %92, %93 : vector<16x128xf32>
    %c0_72 = arith.constant 0 : index
    %c0_73 = arith.constant 0 : index
    %95 = vector.load %arg10[%c0_72, %c0_73] : memref<16x128xf32, #tpu.memory_space<vmem>>, vector<16x128xf32>
    tpu.vector_store %arg10[%c0_72, %c0_73], %94 {strides = array<i32>} : memref<16x128xf32, #tpu.memory_space<vmem>>, vector<16x128xf32>,
    return
  }
  func.func @transform_0(%arg0: i32) -> (i32, i32) {
    %c0_i32 = arith.constant 0 : i32
    %c0_i32_0 = arith.constant 0 : i32
    %c0_i32_1 = arith.constant 0 : i32
    return %c0_i32, %c0_i32_0 : i32, i32
  }
  func.func @transform_1(%arg0: i32) -> (i32, i32, i32) {
    %c0_i32 = arith.constant 0 : i32
    %c0_i32_0 = arith.constant 0 : i32
    %c0_i32_1 = arith.constant 0 : i32
    %c0_i32_2 = arith.constant 0 : i32
    return %c0_i32, %c0_i32_0, %c0_i32_1 : i32, i32, i32
  }
  func.func @transform_2(%arg0: i32) -> (i32, i32, i32) {
    %c0_i32 = arith.constant 0 : i32
    %c0_i32_0 = arith.constant 0 : i32
    %c0_i32_1 = arith.constant 0 : i32
    %c0_i32_2 = arith.constant 0 : i32
    return %c0_i32, %c0_i32_0, %c0_i32_1 : i32, i32, i32
  }
  func.func @transform_3(%arg0: i32) -> (i32, i32, i32) {
    %c0_i32 = arith.constant 0 : i32
    %c0_i32_0 = arith.constant 0 : i32
    %c0_i32_1 = arith.constant 0 : i32
    %c0_i32_2 = arith.constant 0 : i32
    return %c0_i32, %c0_i32_0, %c0_i32_1 : i32, i32, i32
  }
  func.func @transform_4(%arg0: i32) -> (i32, i32) {
    %c0_i32 = arith.constant 0 : i32
    %c0_i32_0 = arith.constant 0 : i32
    %c0_i32_1 = arith.constant 0 : i32
    return %c0_i32, %c0_i32_0 : i32, i32
  }
  func.func @transform_5(%arg0: i32) -> (i32, i32) {
    %c0_i32 = arith.constant 0 : i32
    %c0_i32_0 = arith.constant 0 : i32
    %c0_i32_1 = arith.constant 0 : i32
    return %c0_i32, %c0_i32_0 : i32, i32
  }
  func.func @transform_6(%arg0: i32) -> (i32, i32) {
    %c0_i32 = arith.constant 0 : i32
    %c0_i32_0 = arith.constant 0 : i32
    %c0_i32_1 = arith.constant 0 : i32
    return %c0_i32, %c0_i32_0 : i32, i32
  }
  func.func @transform_7(%arg0: i32) -> (i32, i32) {
    %c0_i32 = arith.constant 0 : i32
    %c0_i32_0 = arith.constant 0 : i32
    %c0_i32_1 = arith.constant 0 : i32
    return %c0_i32, %c0_i32_0 : i32, i32
  }
  func.func @transform_8(%arg0: i32) -> (i32, i32) {
    %c0_i32 = arith.constant 0 : i32
    %c0_i32_0 = arith.constant 0 : i32
    %c0_i32_1 = arith.constant 0 : i32
    return %c0_i32, %c0_i32_0 : i32, i32
  }
  func.func @transform_9(%arg0: i32) -> (i32, i32) {
    %c0_i32 = arith.constant 0 : i32
    %c0_i32_0 = arith.constant 0 : i32
    %c0_i32_1 = arith.constant 0 : i32
    return %c0_i32, %c0_i32_0 : i32, i32
  }
}

</mosaic_0001>

<bundles_post_ra>
// kernel: tpu_custom_call.1
= control target key start
LH: loop header
LB: loop body
LE: loop exit
PB: predicated region body
PF: predicated region fallthrough
CT: control target
= control target key end

     0   :  { %14 = vsyncpa [#allocation3], 0  ;;  %s1104_s0 = inlined_call_operand.hbm [shape: f32[16,128], index: 0, kind: input, shape index: {}]   ;;  %s1105_s1 = inlined_call_operand.hbm [shape: f32[2,16,16], index: 1, kind: input, shape index: {}]   ;;  %s1106_s2 = inlined_call_operand.hbm [shape: f32[3,128,128], index: 2, kind: input, shape index: {}]   ;;  %s1107_s3 = inlined_call_operand.hbm [shape: f32[3,128,128], index: 3, kind: input, shape index: {}]   ;;  %s1108_s4 = inlined_call_operand.hbm [shape: f32[128,128], index: 4, kind: input, shape index: {}]   ;;  %s1109_s5 = inlined_call_operand.vmem [shape: f32[1,128], index: 5, kind: input, shape index: {}]   ;;  %s1110_s6 = inlined_call_operand.vmem [shape: f32[1,128], index: 6, kind: input, shape index: {}]   ;;  %s1111_s7 = inlined_call_operand.vmem [shape: f32[1,128], index: 7, kind: input, shape index: {}]   ;;  %s1112_s8 = inlined_call_operand.vmem [shape: f32[1,128], index: 8, kind: input, shape index: {}]   ;;  %s1113_s9 = inlined_call_operand.hbm [shape: f32[16,128], index: 9, kind: output, shape index: {}]  }
   0x1   :  { %15 = vsyncpa [#allocation6], 0 }
   0x2   :  { %16 = vsyncpa [#allocation9], 0 }
   0x3   :  { %17 = vsyncpa [#allocation4], 0  ;;  %s35_s11 = sshll.u32 %s1105_s1, 4  ;;  %s854_s12 = smov [#allocation5]   ;;  %s36_s11 = int_to_ptr.hbm [resolvable:$true] %s35_s11 }
   0x4   :  { %s37_s13 = sshll.u32 %s854_s12, 4  ;;  %s61_s16 = sshll.u32 %s1107_s3, 4  ;;  %s38_s13 = int_to_ptr.vmem [resolvable:$true] %s37_s13  ;;  %s62_s16 = int_to_ptr.hbm [resolvable:$true] %s61_s16 }
   0x5   :  { %s855_s17 = smov 128   ;;  %s856_s18 = smov 8  }
   0x6   :  { %43 = dma.hbm_to_vmem [thread:$0]  %s36_s11, 512, %s38_s13, [#allocation6], %s855_s17, %s855_s17, %s856_s18  }
   0x7   :  { %s857_s19 = smov [#allocation8]   ;;  %s22_s1 = sshll.u32 %s1104_s0, 4  ;;  %s23_s1 = int_to_ptr.hbm [resolvable:$true] %s22_s1 }
   0x8   :  { %s63_s20 = sshll.u32 %s857_s19, 4  ;;  %s48_s24 = sshll.u32 %s1106_s2, 4  ;;  %s64_s20 = int_to_ptr.vmem [resolvable:$true] %s63_s20  ;;  %s49_s24 = int_to_ptr.hbm [resolvable:$true] %s48_s24 }
   0x9   :  { %69 = dma.hbm_to_vmem [thread:$0]  %s62_s16, 6144, %s64_s20, [#allocation9], %s855_s17, %s855_s17, %s856_s18  }
   0xa   :  { %s858_s25 = smov [#allocation2]   ;;  %s859_s27 = smov [#allocation7]  }
   0xb   :  { %s24_s26 = sshll.u32 %s858_s25, 4  ;;  %s50_s0 = sshll.u32 %s859_s27, 4  ;;  %s25_s26 = int_to_ptr.vmem [resolvable:$true] %s24_s26  ;;  %s51_s0 = int_to_ptr.vmem [resolvable:$true] %s50_s0 }
   0xc   :  { %30 = dma.hbm_to_vmem [thread:$0]  %s23_s1, 256, %s25_s26, [#allocation3], %s855_s17, %s855_s17, %s856_s18  }
   0xd   :  { %s74_s30 = sshll.u32 %s1108_s4, 4  ;;  %s860_s2 = smov [#allocation10]   ;;  %s75_s30 = int_to_ptr.hbm [resolvable:$true] %s74_s30 }
   0xe   :  { %56 = dma.hbm_to_vmem [thread:$0]  %s49_s24, 6144, %s51_s0, [#allocation6], %s855_s17, %s855_s17, %s856_s18  }
   0xf   :  { %s76_s10 = sshll.u32 %s860_s2, 4  ;;  %s77_s10 = int_to_ptr.vmem [resolvable:$true] %s76_s10 }
  0x10   :  { %82 = dma.hbm_to_vmem [thread:$0]  %s75_s30, 2048, %s77_s10, [#allocation9], %s855_s17, %s855_s17, %s856_s18  }
  0x11   :  { %846 = dma.done.wait [#allocation3], 256  }
  0x12   :  { %847 = vsyncadd [#allocation3], 4294967040 }
  0x13   :  { %848 = dma.done.wait [#allocation6], 6656  }
  0x14   :  { %849 = vsyncadd [#allocation6], 4294960640 }
  0x15   :  { %850 = dma.done.wait [#allocation9], 8192  }
  0x16   :  { %851 = vsyncadd [#allocation9], 4294959104  ;;  %v942_v0 = vld [vmem:[#allocation2 + $0x8] sm:$0xff]  ;;  %v944_v1 = vld [vmem:[#allocation2] sm:$0xff]  ;;  %vm115_vm0 = vcmask 130048   ;;  %s665_s21 = sshll.u32 %s1113_s9, 4  ;;  %s666_s21 = int_to_ptr.hbm [resolvable:$true] %s665_s21 }
  0x17   :  { %136 = vmatpush.msra.mxu0 %v942_v0  ;;  %v947_v2 = vld [vmem:[#allocation5] sm:$0xff]  ;;  %168 = vmatpush.msra.mxu1 %v942_v0  ;;  %v950_v3 = vld [vmem:[#allocation5 + $0x10] sm:$0xff]  ;;  %v209_v4 = vld [vmem:[#allocation7 + $0xf8] sm:$0xff] }
  0x18   :  { %v192_v5 = vld [vmem:[#allocation7 + $0x78] sm:$0xff]  ;;  %v208_v6 = vld [vmem:[#allocation7 + $0xf0] sm:$0xff]  ;;  %210 = vmatpush.msra.mxu2 %v209_v4  ;;  %v207_v9 = vld [vmem:[#allocation7 + $0xe8] sm:$0xff] }
  0x19   :  { %137 = vmatpush.msra.mxu0 %v944_v1  ;;  %169 = vmatpush.msra.mxu1 %v944_v1  ;;  %v191_v7 = vld [vmem:[#allocation7 + $0x70] sm:$0xff]  ;;  %v272_v8 = vld [vmem:[#allocation7 + $0x178] sm:$0xff]  ;;  %v190_v10 = vld [vmem:[#allocation7 + $0x68] sm:$0xff] }
  0x1a   :  { %680 = vmatmul.msk.f32.vlgmr.msra.gmra.mxu0 %vm115_vm0, %v947_v2  ;;  %682 = vmatmul.msk.f32.vlgmr.msra.gmra.mxu1 %vm115_vm0, %v950_v3  ;;  %v271_v11 = vld [vmem:[#allocation7 + $0x170] sm:$0xff]  ;;  %v270_v12 = vld [vmem:[#allocation7 + $0x168] sm:$0xff]  ;;  %v206_v13 = vld [vmem:[#allocation7 + $0xe0] sm:$0xff] }
  0x1b   :  { %233 = vmatpush.msra.mxu3 %v192_v5  ;;  %273 = vmatpush.msrb.mxu0 %v272_v8  ;;  %v189_v14 = vld [vmem:[#allocation7 + $0x60] sm:$0xff]  ;;  %v958_v15 = vld [vmem:[#allocation5 + $0x8] sm:$0xff]  ;;  %v960_v16 = vld [vmem:[#allocation5 + $0x18] sm:$0xff] }
  0x1c   :  { %211 = vmatpush.msra.mxu2 %v208_v6  ;;  %v205_v17 = vld [vmem:[#allocation7 + $0xd8] sm:$0xff]  ;;  %v269_v19 = vld [vmem:[#allocation7 + $0x160] sm:$0xff]  ;;  %v204_v20 = vld [vmem:[#allocation7 + $0xd0] sm:$0xff] }
  0x1d   :  { %234 = vmatpush.msra.mxu3 %v191_v7  ;;  %274 = vmatpush.msrb.mxu0 %v271_v11  ;;  %v188_v18 = vld [vmem:[#allocation7 + $0x58] sm:$0xff]  ;;  %v187_v21 = vld [vmem:[#allocation7 + $0x50] sm:$0xff]  ;;  %v203_v23 = vld [vmem:[#allocation7 + $0xc8] sm:$0xff] }
  0x1e   :  { %212 = vmatpush.msra.mxu2 %v207_v9  ;;  %v268_v22 = vld [vmem:[#allocation7 + $0x158] sm:$0xff]  ;;  %v186_v24 = vld [vmem:[#allocation7 + $0x48] sm:$0xff]  ;;  %v267_v25 = vld [vmem:[#allocation7 + $0x150] sm:$0xff] }
  0x1f   :  { %235 = vmatpush.msra.mxu3 %v190_v10  ;;  %275 = vmatpush.msrb.mxu0 %v270_v12  ;;  %v202_v26 = vld [vmem:[#allocation7 + $0xc0] sm:$0xff]  ;;  %v266_v28 = vld [vmem:[#allocation7 + $0x148] sm:$0xff]  ;;  %v201_v29 = vld [vmem:[#allocation7 + $0xb8] sm:$0xff] }
  0x20   :  { %213 = vmatpush.msra.mxu2 %v206_v13  ;;  %v185_v27 = vld [vmem:[#allocation7 + $0x40] sm:$0xff]  ;;  %v184_v30 = vld [vmem:[#allocation7 + $0x38] sm:$0xff]  ;;  %v200_v32 = vld [vmem:[#allocation7 + $0xb0] sm:$0xff] }
  0x21   :  { %236 = vmatpush.msra.mxu3 %v189_v14  ;;  %276 = vmatpush.msrb.mxu0 %v269_v19  ;;  %v265_v31 = vld [vmem:[#allocation7 + $0x140] sm:$0xff]  ;;  %v183_v33 = vld [vmem:[#allocation7 + $0x30] sm:$0xff]  ;;  %v264_v34 = vld [vmem:[#allocation7 + $0x138] sm:$0xff] }
  0x22   :  { %681 = vmatmul.msk.f32.gmra.mxu0 %vm115_vm0, %v958_v15  ;;  %683 = vmatmul.msk.f32.gmra.mxu1 %vm115_vm0, %v960_v16  ;;  %v199_v35 = vld [vmem:[#allocation7 + $0xa8] sm:$0xff]  ;;  %v263_v37 = vld [vmem:[#allocation7 + $0x130] sm:$0xff]  ;;  %v198_v38 = vld [vmem:[#allocation7 + $0xa0] sm:$0xff] }
  0x23   :  { %214 = vmatpush.msra.mxu2 %v205_v17  ;;  %237 = vmatpush.msra.mxu3 %v188_v18  ;;  %v182_v36 = vld [vmem:[#allocation7 + $0x28] sm:$0xff]  ;;  %v181_v39 = vld [vmem:[#allocation7 + $0x20] sm:$0xff]  ;;  %v197_v41 = vld [vmem:[#allocation7 + $0x98] sm:$0xff] }
  0x24   :  { %277 = vmatpush.msrb.mxu0 %v268_v22  ;;  %v262_v40 = vld [vmem:[#allocation7 + $0x128] sm:$0xff]  ;;  %v180_v42 = vld [vmem:[#allocation7 + $0x18] sm:$0xff]  ;;  %v196_v43 = vld [vmem:[#allocation7 + $0x90] sm:$0xff] }
  0x25   :  { %215 = vmatpush.msra.mxu2 %v204_v20  ;;  %238 = vmatpush.msra.mxu3 %v187_v21  ;;  %v179_v44 = vld [vmem:[#allocation7 + $0x10] sm:$0xff]  ;;  %v195_v45 = vld [vmem:[#allocation7 + $0x88] sm:$0xff]  ;;  %v194_v47 = vld [vmem:[#allocation7 + $0x80] sm:$0xff] }
  0x26   :  { %278 = vmatpush.msrb.mxu0 %v267_v25  ;;  %v178_v46 = vld [vmem:[#allocation7 + $0x8] sm:$0xff]  ;;  %v177_v48 = vld [vmem:[#allocation7] sm:$0xff]  ;;  %v260_v50 = vld [vmem:[#allocation7 + $0x118] sm:$0xff] }
  0x27   :  { %216 = vmatpush.msra.mxu2 %v203_v23  ;;  %239 = vmatpush.msra.mxu3 %v186_v24  ;;  %v261_v49 = vld [vmem:[#allocation7 + $0x120] sm:$0xff]  ;;  %v259_v51 = vld [vmem:[#allocation7 + $0x110] sm:$0xff]  ;;  %v258_v52 = vld [vmem:[#allocation7 + $0x108] sm:$0xff] }
  0x28   :  { %279 = vmatpush.msrb.mxu0 %v266_v28  ;;  %v257_v53 = vld [vmem:[#allocation7 + $0x100] sm:$0xff]  ;;  %v968_v54 = vld [vmem:[#allocation10 + $0x78] sm:$0xff]  ;;  %v970_v55 = vld [vmem:[#allocation10 + $0x70] sm:$0xff] }
  0x29   :  { %217 = vmatpush.msra.mxu2 %v202_v26  ;;  %240 = vmatpush.msra.mxu3 %v185_v27  ;;  %v976_v60 = vld [vmem:[#allocation10 + $0x68] sm:$0xff]  ;;  %v980_v61 = vld [vmem:[#allocation10 + $0x60] sm:$0xff]  ;;  %v984_v62 = vld [vmem:[#allocation10 + $0x58] sm:$0xff] }
  0x2a   :  { %280 = vmatpush.msrb.mxu0 %v265_v31  ;;  %330 = vmatpush.msrb.mxu1 %v968_v54  ;;  %v988_v63 = vld [vmem:[#allocation10 + $0x50] sm:$0xff]  ;;  %v992_v4 = vld [vmem:[#allocation10 + $0x48] sm:$0xff]  ;;  %v996_v5 = vld [vmem:[#allocation10 + $0x40] sm:$0xff] }
  0x2b   :  { %218 = vmatpush.msra.mxu2 %v201_v29  ;;  %241 = vmatpush.msra.mxu3 %v184_v30  ;;  %v1000_v6 = vld [vmem:[#allocation10 + $0x38] sm:$0xff]  ;;  %v1004_v7 = vld [vmem:[#allocation10 + $0x30] sm:$0xff]  ;;  %v1008_v8 = vld [vmem:[#allocation10 + $0x28] sm:$0xff] }
  0x2c   :  { %281 = vmatpush.msrb.mxu0 %v264_v34  ;;  %331 = vmatpush.msrb.mxu1 %v970_v55  ;;  %v1012_v9 = vld [vmem:[#allocation10 + $0x20] sm:$0xff]  ;;  %v1014_v10 = vld [vmem:[#allocation10 + $0x18] sm:$0xff]  ;;  %v1018_v11 = vld [vmem:[#allocation10 + $0x10] sm:$0xff] }
  0x2d   :  { %219 = vmatpush.msra.mxu2 %v200_v32  ;;  %242 = vmatpush.msra.mxu3 %v183_v33  ;;  %v1022_v12 = vld [vmem:[#allocation10 + $0x8] sm:$0xff]  ;;  %v1026_v13 = vld [vmem:[#allocation10] sm:$0xff] }
  0x2e   :  { %282 = vmatpush.msrb.mxu0 %v263_v37  ;;  %332 = vmatpush.msrb.mxu1 %v976_v60 }
  0x2f   :  { %220 = vmatpush.msra.mxu2 %v199_v35  ;;  %243 = vmatpush.msra.mxu3 %v182_v36 }
  0x30   :  { %283 = vmatpush.msrb.mxu0 %v262_v40  ;;  %333 = vmatpush.msrb.mxu1 %v980_v61 }
  0x31   :  { %221 = vmatpush.msra.mxu2 %v198_v38  ;;  %244 = vmatpush.msra.mxu3 %v181_v39 }
  0x32   :  { %284 = vmatpush.msrb.mxu0 %v261_v49  ;;  %334 = vmatpush.msrb.mxu1 %v984_v62  ;;  %v472_v49 = vld [vmem:[#allocation8 + $0xc0] sm:$0xff] }
  0x33   :  { %222 = vmatpush.msra.mxu2 %v197_v41  ;;  %245 = vmatpush.msra.mxu3 %v180_v42  ;;  %v479_v42 = vld [vmem:[#allocation8 + $0xf8] sm:$0xff] }
  0x34   :  { %285 = vmatpush.msrb.mxu0 %v260_v50  ;;  %335 = vmatpush.msrb.mxu1 %v988_v63  ;;  %v471_v50 = vld [vmem:[#allocation8 + $0xb8] sm:$0xff] }
  0x35   :  { %223 = vmatpush.msra.mxu2 %v196_v43  ;;  %246 = vmatpush.msra.mxu3 %v179_v44  ;;  %v478_v43 = vld [vmem:[#allocation8 + $0xf0] sm:$0xff]  ;;  %v477_v44 = vld [vmem:[#allocation8 + $0xe8] sm:$0xff] }
  0x36   :  { %286 = vmatpush.msrb.mxu0 %v259_v51  ;;  %336 = vmatpush.msrb.mxu1 %v992_v4  ;;  %v470_v51 = vld [vmem:[#allocation8 + $0xb0] sm:$0xff] }
  0x37   :  { %224 = vmatpush.msra.mxu2 %v195_v45  ;;  %247 = vmatpush.msra.mxu3 %v178_v46  ;;  %v476_v45 = vld [vmem:[#allocation8 + $0xe0] sm:$0xff]  ;;  %v475_v46 = vld [vmem:[#allocation8 + $0xd8] sm:$0xff] }
  0x38   :  { %287 = vmatpush.msrb.mxu0 %v258_v52  ;;  %337 = vmatpush.msrb.mxu1 %v996_v5  ;;  %v469_v52 = vld [vmem:[#allocation8 + $0xa8] sm:$0xff] }
  0x39   :  { %225 = vmatpush.msra.mxu2 %v194_v47  ;;  %248 = vmatpush.msra.mxu3 %v177_v48  ;;  %v474_v47 = vld [vmem:[#allocation8 + $0xd0] sm:$0xff]  ;;  %v473_v48 = vld [vmem:[#allocation8 + $0xc8] sm:$0xff] }
  0x3a   :  { %226 = vmatmul.f32.vlgmr.msra.gmra.mxu2 %v944_v1  ;;  %288 = vmatpush.msrb.mxu0 %v257_v53  ;;  %v468_v53 = vld [vmem:[#allocation8 + $0xa0] sm:$0xff] }
  0x3b   :  { %350 = vmatpush.msrb.mxu2 %v968_v54  ;;  %338 = vmatpush.msrb.mxu1 %v1000_v6 }
  0x3c   :  { %480 = vmatpush.msra.mxu0 %v479_v42  ;;  %v534_v42 = vld [vmem:[#allocation8 + $0x138] sm:$0xff] }
  0x3d   :  { %351 = vmatpush.msrb.mxu2 %v970_v55  ;;  %339 = vmatpush.msrb.mxu1 %v1004_v7 }
  0x3e   :  { %481 = vmatpush.msra.mxu0 %v478_v43  ;;  %v533_v43 = vld [vmem:[#allocation8 + $0x130] sm:$0xff] }
  0x3f   :  { %352 = vmatpush.msrb.mxu2 %v976_v60  ;;  %340 = vmatpush.msrb.mxu1 %v1008_v8 }
  0x40   :  { %482 = vmatpush.msra.mxu0 %v477_v44  ;;  %v532_v44 = vld [vmem:[#allocation8 + $0x128] sm:$0xff] }
  0x41   :  { %353 = vmatpush.msrb.mxu2 %v980_v61  ;;  %341 = vmatpush.msrb.mxu1 %v1012_v9 }
  0x42   :  { %229 = vmatmul.f32.gmra.mxu2 %v942_v0  ;;  %483 = vmatpush.msra.mxu0 %v476_v45  ;;  %v451_v45 = vld [vmem:[#allocation8 + $0x20] sm:$0xff] }
  0x43   :  { %354 = vmatpush.msrb.mxu2 %v984_v62  ;;  %342 = vmatpush.msrb.mxu1 %v1014_v10 }
  0x44   :  { %484 = vmatpush.msra.mxu0 %v475_v46  ;;  %v450_v46 = vld [vmem:[#allocation8 + $0x18] sm:$0xff] }
  0x45   :  { %355 = vmatpush.msrb.mxu2 %v988_v63  ;;  %343 = vmatpush.msrb.mxu1 %v1018_v11 }
  0x46   :  { %485 = vmatpush.msra.mxu0 %v474_v47  ;;  %v449_v47 = vld [vmem:[#allocation8 + $0x10] sm:$0xff] }
  0x47   :  { %356 = vmatpush.msrb.mxu2 %v992_v4  ;;  %344 = vmatpush.msrb.mxu1 %v1022_v12 }
  0x48   :  { %486 = vmatpush.msra.mxu0 %v473_v48  ;;  %v448_v48 = vld [vmem:[#allocation8 + $0x8] sm:$0xff] }
  0x49   :  { %357 = vmatpush.msrb.mxu2 %v996_v5  ;;  %345 = vmatpush.msrb.mxu1 %v1026_v13 }
  0x4a   :  { %487 = vmatpush.msra.mxu0 %v472_v49  ;;  %v531_v49 = vld [vmem:[#allocation8 + $0x120] sm:$0xff] }
  0x4b   :  { %358 = vmatpush.msrb.mxu2 %v1000_v6 }
  0x4c   :  { %488 = vmatpush.msra.mxu0 %v471_v50  ;;  %v447_v50 = vld [vmem:[#allocation8] sm:$0xff] }
  0x4d   :  { %359 = vmatpush.msrb.mxu2 %v1004_v7 }
  0x4e   :  { %489 = vmatpush.msra.mxu0 %v470_v51  ;;  %v530_v51 = vld [vmem:[#allocation8 + $0x118] sm:$0xff] }
  0x4f   :  { %360 = vmatpush.msrb.mxu2 %v1008_v8 }
  0x50   :  { %490 = vmatpush.msra.mxu0 %v469_v52  ;;  %v529_v52 = vld [vmem:[#allocation8 + $0x110] sm:$0xff] }
  0x51   :  { %361 = vmatpush.msrb.mxu2 %v1012_v9 }
  0x52   :  { %491 = vmatpush.msra.mxu0 %v468_v53  ;;  %v528_v53 = vld [vmem:[#allocation8 + $0x108] sm:$0xff] }
  0x53   :  { %362 = vmatpush.msrb.mxu2 %v1014_v10 }
  0x55   :  { %363 = vmatpush.msrb.mxu2 %v1018_v11 }
  0x57   :  { %364 = vmatpush.msrb.mxu2 %v1022_v12 }
  0x59   :  { %365 = vmatpush.msrb.mxu2 %v1026_v13 }
  0x5b   :  { %584 = vmatpush.msra.mxu2 %v968_v54 }
  0x5d   :  { %585 = vmatpush.msra.mxu2 %v970_v55 }
  0x5f   :  { %586 = vmatpush.msra.mxu2 %v976_v60 }
  0x61   :  { %587 = vmatpush.msra.mxu2 %v980_v61 }
  0x63   :  { %588 = vmatpush.msra.mxu2 %v984_v62 }
  0x65   :  { %589 = vmatpush.msra.mxu2 %v988_v63 }
  0x67   :  { %590 = vmatpush.msra.mxu2 %v992_v4 }
  0x69   :  { %591 = vmatpush.msra.mxu2 %v996_v5 }
  0x6b   :  { %592 = vmatpush.msra.mxu2 %v1000_v6 }
  0x6d   :  { %593 = vmatpush.msra.mxu2 %v1004_v7 }
  0x6f   :  { %594 = vmatpush.msra.mxu2 %v1008_v8 }
  0x71   :  { %595 = vmatpush.msra.mxu2 %v1012_v9 }
  0x73   :  { %596 = vmatpush.msra.mxu2 %v1014_v10 }
  0x75   :  { %597 = vmatpush.msra.mxu2 %v1018_v11 }
  0x77   :  { %598 = vmatpush.msra.mxu2 %v1022_v12 }
  0x79   :  { %599 = vmatpush.msra.mxu2 %v1026_v13 }
  0x97   :  { %v139_v56 = vpop.f32.mrf.mxu0  ;;  %v171_v57 = vpop.f32.mrf.mxu1 }
  0x98   :  { %249 = vmatmul.f32.vlgmr.msra.gmra.mxu3 %v139_v56  ;;  %289 = vmatmul.f32.vlgmr.msrb.gmra.mxu0 %v171_v57  ;;  %v467_v56 = vld [vmem:[#allocation8 + $0x98] sm:$0xff] }
  0x99   :  { %492 = vmatpush.msra.mxu0 %v467_v56  ;;  %v527_v56 = vld [vmem:[#allocation8 + $0x100] sm:$0xff] }
  0x9f   :  { %v142_v58 = vpop.f32.mrf.mxu0  ;;  %v174_v59 = vpop.f32.mrf.mxu1 }
  0xa0   :  { %252 = vmatmul.f32.gmra.mxu3 %v142_v58  ;;  %292 = vmatmul.f32.gmra.mxu0 %v174_v59  ;;  %v466_v58 = vld [vmem:[#allocation8 + $0x90] sm:$0xff] }
  0xa1   :  { %493 = vmatpush.msra.mxu0 %v466_v58 }
  0xbd   :  { %v227_v14 = vpop.f32.mrf.mxu2 }
  0xc5   :  { %v230_v20 = vpop.f32.mrf.mxu2 }
 0x115   :  { %v290_v17 = vpop.f32.mrf.mxu0 }
 0x11b   :  { %v250_v18 = vpop.f32.mrf.mxu3 }
 0x11c   :  { %v251_v19 = vadd.f32 %v250_v18, %v227_v14  ;;  %v465_v14 = vld [vmem:[#allocation8 + $0x88] sm:$0xff] }
 0x11d   :  { %v293_v22 = vpop.f32.mrf.mxu0  ;;  %494 = vmatpush.msra.mxu0 %v465_v14 }
 0x11e   :  { %v1039_v23 = vadd.f32 %v290_v17, %v251_v19  ;;  %v464_v17 = vld [vmem:[#allocation8 + $0x80] sm:$0xff] }
 0x11f   :  { %495 = vmatpush.msra.mxu0 %v464_v17 }
 0x120   :  { %v305_v26 = vmul.f32 %v1039_v23, %v1039_v23 }
 0x121   :  { %604 = vmatpush.msrb.mxu0 %v968_v54 }
 0x123   :  { %v253_v21 = vpop.f32.mrf.mxu3  ;;  %605 = vmatpush.msrb.mxu0 %v970_v55 }
 0x124   :  { %v254_v24 = vadd.f32 %v253_v21, %v230_v20 }
 0x125   :  { %606 = vmatpush.msrb.mxu0 %v976_v60 }
 0x126   :  { %v1042_v25 = vadd.f32 %v293_v22, %v254_v24 }
 0x127   :  { %607 = vmatpush.msrb.mxu0 %v980_v61  ;;  %v385_v61 = vld [vmem:[%s1109_s5] sm:$0x1] }
 0x128   :  { %v298_v27 = vadd.f32 %v1042_v25, %v1039_v23  ;;  %v306_v28 = vmul.f32 %v1042_v25, %v1042_v25 }
 0x129   :  { %608 = vmatpush.msrb.mxu0 %v984_v62 }
 0x12a   :  { %v299_v29 = vrot.slane %v298_v27, 4  ;;  %v307_v30 = vadd.f32 %v306_v28, %v305_v26 }
 0x12b   :  { %609 = vmatpush.msrb.mxu0 %v988_v63 }
 0x12c   :  { %v300_v31 = vadd.f32 %v299_v29, %v298_v27  ;;  %v308_v32 = vrot.slane %v307_v30, 4 }
 0x12d   :  { %610 = vmatpush.msrb.mxu0 %v992_v4 }
 0x12e   :  { %v301_v33 = vrot.slane %v300_v31, 2  ;;  %v309_v34 = vadd.f32 %v308_v32, %v307_v30 }
 0x12f   :  { %611 = vmatpush.msrb.mxu0 %v996_v5 }
 0x130   :  { %v302_v35 = vadd.f32 %v301_v33, %v300_v31  ;;  %v310_v36 = vrot.slane %v309_v34, 2  ;;  %v540_v33 = vld [vmem:[#allocation8 + $0x168] sm:$0xff] }
 0x131   :  { %612 = vmatpush.msrb.mxu0 %v1000_v6 }
 0x132   :  { %v303_v37 = vrot.slane %v302_v35, 1  ;;  %v311_v38 = vadd.f32 %v310_v36, %v309_v34  ;;  %v539_v34 = vld [vmem:[#allocation8 + $0x160] sm:$0xff]  ;;  %v538_v36 = vld [vmem:[#allocation8 + $0x158] sm:$0xff] }
 0x133   :  { %613 = vmatpush.msrb.mxu0 %v1004_v7  ;;  %v696_v7 = vld [vmem:[%s1110_s6] ss:$0 sm:$0xff] }
 0x134   :  { %v304_v39 = vadd.f32 %v303_v37, %v302_v35  ;;  %v312_v40 = vrot.slane %v311_v38, 1  ;;  %v458_v35 = vld [vmem:[#allocation8 + $0x58] sm:$0xff]  ;;  %v456_v37 = vld [vmem:[#allocation8 + $0x48] sm:$0xff] }
 0x135   :  { %614 = vmatpush.msrb.mxu0 %v1008_v8 }
 0x136   :  { %346 = vmatmul.f32.vlgmr.msrb.gmra.mxu1 %v304_v39  ;;  %v313_v41 = vadd.f32 %v312_v40, %v311_v38  ;;  %v536_v38 = vld [vmem:[#allocation8 + $0x148] sm:$0xff]  ;;  %v455_v39 = vld [vmem:[#allocation8 + $0x40] sm:$0xff] }
 0x137   :  { %615 = vmatpush.msrb.mxu0 %v1012_v9  ;;  %v535_v40 = vld [vmem:[#allocation8 + $0x140] sm:$0xff] }
 0x138   :  { %366 = vmatmul.f32.vlgmr.msrb.gmra.mxu2 %v313_v41  ;;  %v454_v41 = vld [vmem:[#allocation8 + $0x38] sm:$0xff] }
 0x139   :  { %616 = vmatpush.msrb.mxu0 %v1014_v10  ;;  %v461_v10 = vld [vmem:[#allocation8 + $0x70] sm:$0xff] }
 0x13b   :  { %617 = vmatpush.msrb.mxu0 %v1018_v11  ;;  %v541_v11 = vld [vmem:[#allocation8 + $0x170] sm:$0xff] }
 0x13d   :  { %618 = vmatpush.msrb.mxu0 %v1022_v12  ;;  %v460_v12 = vld [vmem:[#allocation8 + $0x68] sm:$0xff] }
 0x13f   :  { %619 = vmatpush.msrb.mxu0 %v1026_v13  ;;  %v459_v13 = vld [vmem:[#allocation8 + $0x60] sm:$0xff] }
 0x1b3   :  { %v347_v57 = vpop.f32.mrf.mxu1 }
 0x1b4   :  { %v370_v59 = vmul.f32 0.0078125, %v347_v57 }
 0x1b6   :  { %v372_v19 = vmul.f32 %v370_v59, %v370_v59  ;;  %v387_v62 = vperm.slane %v370_v59, 0 }
 0x1b8   :  { %v388_v5 = vsub.f32 %v1039_v23, %v387_v62  ;;  %v389_v6 = vsub.f32 %v1042_v25, %v387_v62  ;;  %v462_v23 = vld [vmem:[#allocation8 + $0x78] sm:$0xff] }
 0x1b9   :  { %v542_v25 = vld [vmem:[#allocation8 + $0x178] sm:$0xff] }
 0x1bb   :  { %v367_v18 = vpop.f32.mrf.mxu2 }
 0x1bc   :  { %v371_v20 = vmul.f32 0.0078125, %v367_v18 }
 0x1be   :  { %v373_v21 = vsub.f32 %v371_v20, %v372_v19 }
 0x1c0   :  { %v374_v22 = vadd.f32 1e-05, %v373_v21 }
 0x1c2   :  { %698 = vrsqrt.f32 %v374_v22  ;;  %vm381_vm2 = vweird.f32 %v374_v22 }
 0x1c8   :  { %v699_v24 = vpop.eup %698 }
 0x1c9   :  { %v376_v26 = vmul.f32 %v699_v24, %v374_v22  ;;  %vm382_vm1 = vweird.f32 %v699_v24 }
 0x1ca   :  { %vm383_vm3 = vmor %vm381_vm2, %vm382_vm1 }
 0x1cb   :  { %v377_v27 = vmul.f32 %v699_v24, %v376_v26 }
 0x1cd   :  { %v378_v54 = vmul.f32 0.5, %v377_v27 }
 0x1cf   :  { %v379_v55 = vsub.f32 1.5, %v378_v54 }
 0x1d1   :  { %v380_v60 = vmul.f32 %v699_v24, %v379_v55 }
 0x1d3   :  { %v384_v63 = vsel %vm383_vm3, %v699_v24, %v380_v60 }
 0x1d4   :  { %v386_v4 = vmul.f32 %v385_v61, %v384_v63 }
 0x1d6   :  { %v390_v28 = vperm.slane %v386_v4, 0 }
 0x1d8   :  { %v392_v29 = vmul.f32 %v390_v28, %v389_v6  ;;  %v391_v30 = vmul.f32 %v390_v28, %v388_v5 }
 0x1da   :  { %v398_v8 = vadd.f32 %v696_v7, %v392_v29  ;;  %v397_v31 = vadd.f32 %v696_v7, %v391_v30 }
 0x1dc   :  { %v400_v9 = vmax.f32 %v398_v8, 0.0  ;;  %v399_v32 = vmax.f32 %v397_v31, 0.0 }
 0x1de   :  { %415 = vmatpush.msra.mxu1 %v400_v9  ;;  %438 = vmatpush.msrb.mxu3 %v400_v9 }
 0x1df   :  { %496 = vmatmul.f32.vlgmr.msra.gmra.mxu0 %v399_v32 }
 0x1e0   :  { %416 = vmatpush.msra.mxu1 %v399_v32  ;;  %439 = vmatpush.msrb.mxu3 %v399_v32 }
 0x1e1   :  { %684 = vmatmul.msk.f32.vlgmr.msra.gmra.mxu1 %vm115_vm0, %v947_v2  ;;  %686 = vmatmul.msk.f32.vlgmr.msrb.gmra.mxu3 %vm115_vm0, %v950_v3  ;;  %v457_v2 = vld [vmem:[#allocation8 + $0x50] sm:$0xff] }
 0x1e2   :  { %503 = vmatpush.msrb.mxu1 %v462_v23  ;;  %543 = vmatpush.msra.mxu3 %v542_v25  ;;  %v537_v3 = vld [vmem:[#allocation8 + $0x150] sm:$0xff] }
 0x1e4   :  { %504 = vmatpush.msrb.mxu1 %v461_v10  ;;  %544 = vmatpush.msra.mxu3 %v541_v11 }
 0x1e6   :  { %505 = vmatpush.msrb.mxu1 %v460_v12  ;;  %545 = vmatpush.msra.mxu3 %v540_v33 }
 0x1e7   :  { %499 = vmatmul.f32.gmra.mxu0 %v400_v9 }
 0x1e8   :  { %506 = vmatpush.msrb.mxu1 %v459_v13  ;;  %546 = vmatpush.msra.mxu3 %v539_v34 }
 0x1e9   :  { %685 = vmatmul.msk.f32.gmra.mxu1 %vm115_vm0, %v958_v15  ;;  %687 = vmatmul.msk.f32.gmra.mxu3 %vm115_vm0, %v960_v16  ;;  %v453_v15 = vld [vmem:[#allocation8 + $0x30] sm:$0xff]  ;;  %v452_v16 = vld [vmem:[#allocation8 + $0x28] sm:$0xff] }
 0x1ea   :  { %507 = vmatpush.msrb.mxu1 %v458_v35  ;;  %547 = vmatpush.msra.mxu3 %v538_v36 }
 0x1ec   :  { %508 = vmatpush.msrb.mxu1 %v457_v2  ;;  %548 = vmatpush.msra.mxu3 %v537_v3 }
 0x1ee   :  { %509 = vmatpush.msrb.mxu1 %v456_v37  ;;  %549 = vmatpush.msra.mxu3 %v536_v38  ;;  %v639_v38 = vld [vmem:[%s1111_s7] sm:$0x1]  ;;  %s861_s7 = smov [#allocation11]  }
 0x1ef   :  { %s663_s16 = sshll.u32 %s861_s7, 4  ;;  %s664_s16 = int_to_ptr.vmem [resolvable:$true] %s663_s16 }
 0x1f0   :  { %510 = vmatpush.msrb.mxu1 %v455_v39  ;;  %550 = vmatpush.msra.mxu3 %v535_v40 }
 0x1f2   :  { %511 = vmatpush.msrb.mxu1 %v454_v41  ;;  %551 = vmatpush.msra.mxu3 %v534_v42 }
 0x1f4   :  { %512 = vmatpush.msrb.mxu1 %v453_v15  ;;  %552 = vmatpush.msra.mxu3 %v533_v43 }
 0x1f6   :  { %513 = vmatpush.msrb.mxu1 %v452_v16  ;;  %553 = vmatpush.msra.mxu3 %v532_v44  ;;  %v697_v16 = vld [vmem:[%s1112_s8] ss:$0 sm:$0xff] }
 0x1f8   :  { %514 = vmatpush.msrb.mxu1 %v451_v45  ;;  %554 = vmatpush.msra.mxu3 %v531_v49 }
 0x1fa   :  { %515 = vmatpush.msrb.mxu1 %v450_v46  ;;  %555 = vmatpush.msra.mxu3 %v530_v51 }
 0x1fc   :  { %516 = vmatpush.msrb.mxu1 %v449_v47  ;;  %556 = vmatpush.msra.mxu3 %v529_v52 }
 0x1fe   :  { %517 = vmatpush.msrb.mxu1 %v448_v48  ;;  %557 = vmatpush.msra.mxu3 %v528_v53 }
 0x200   :  { %518 = vmatpush.msrb.mxu1 %v447_v50  ;;  %558 = vmatpush.msra.mxu3 %v527_v56 }
 0x25c   :  { %v497_v18 = vpop.f32.mrf.mxu0 }
 0x25e   :  { %v418_v57 = vpop.f32.mrf.mxu1 }
 0x25f   :  { %519 = vmatmul.f32.vlgmr.msrb.gmra.mxu1 %v418_v57 }
 0x264   :  { %v441_v58 = vpop.f32.mrf.mxu3  ;;  %v500_v22 = vpop.f32.mrf.mxu0 }
 0x265   :  { %559 = vmatmul.f32.vlgmr.msra.gmra.mxu3 %v441_v58 }
 0x266   :  { %v421_v59 = vpop.f32.mrf.mxu1 }
 0x267   :  { %522 = vmatmul.f32.gmra.mxu1 %v421_v59 }
 0x26c   :  { %v444_v14 = vpop.f32.mrf.mxu3 }
 0x26d   :  { %562 = vmatmul.f32.gmra.mxu3 %v444_v14 }
 0x2dc   :  { %v520_v17 = vpop.f32.mrf.mxu1 }
 0x2dd   :  { %v521_v21 = vadd.f32 %v520_v17, %v497_v18 }
 0x2e4   :  { %v523_v20 = vpop.f32.mrf.mxu1 }
 0x2e5   :  { %v524_v24 = vadd.f32 %v523_v20, %v500_v22 }
 0x2e8   :  { %v560_v19 = vpop.f32.mrf.mxu3 }
 0x2e9   :  { %v566_v26 = vadd.f32 %v560_v19, %v521_v21 }
 0x2eb   :  { %v575_v55 = vmul.f32 %v566_v26, %v566_v26 }
 0x2f0   :  { %v563_v27 = vpop.f32.mrf.mxu3 }
 0x2f1   :  { %v567_v54 = vadd.f32 %v563_v27, %v524_v24 }
 0x2f3   :  { %v568_v60 = vadd.f32 %v567_v54, %v566_v26  ;;  %v576_v61 = vmul.f32 %v567_v54, %v567_v54 }
 0x2f5   :  { %v569_v62 = vrot.slane %v568_v60, 4  ;;  %v577_v63 = vadd.f32 %v576_v61, %v575_v55 }
 0x2f7   :  { %v570_v4 = vadd.f32 %v569_v62, %v568_v60  ;;  %v578_v5 = vrot.slane %v577_v63, 4 }
 0x2f9   :  { %v571_v6 = vrot.slane %v570_v4, 2  ;;  %v579_v28 = vadd.f32 %v578_v5, %v577_v63 }
 0x2fb   :  { %v572_v7 = vadd.f32 %v571_v6, %v570_v4  ;;  %v580_v29 = vrot.slane %v579_v28, 2 }
 0x2fd   :  { %v573_v30 = vrot.slane %v572_v7, 1  ;;  %v581_v8 = vadd.f32 %v580_v29, %v579_v28 }
 0x2ff   :  { %v574_v31 = vadd.f32 %v573_v30, %v572_v7  ;;  %v582_v9 = vrot.slane %v581_v8, 1 }
 0x301   :  { %600 = vmatmul.f32.vlgmr.msra.gmra.mxu2 %v574_v31  ;;  %v583_v32 = vadd.f32 %v582_v9, %v581_v8 }
 0x303   :  { %620 = vmatmul.f32.vlgmr.msrb.gmra.mxu0 %v583_v32 }
 0x380   :  { %v621_v23 = vpop.f32.mrf.mxu0 }
 0x381   :  { %v625_v11 = vmul.f32 0.0078125, %v621_v23 }
 0x384   :  { %v601_v25 = vpop.f32.mrf.mxu2 }
 0x385   :  { %v624_v10 = vmul.f32 0.0078125, %v601_v25 }
 0x387   :  { %v626_v12 = vmul.f32 %v624_v10, %v624_v10  ;;  %v641_v39 = vperm.slane %v624_v10, 0 }
 0x389   :  { %v627_v33 = vsub.f32 %v625_v11, %v626_v12  ;;  %v642_v42 = vsub.f32 %v566_v26, %v641_v39  ;;  %v643_v15 = vsub.f32 %v567_v54, %v641_v39 }
 0x38b   :  { %v628_v13 = vadd.f32 1e-05, %v627_v33 }
 0x38d   :  { %700 = vrsqrt.f32 %v628_v13  ;;  %vm635_vm5 = vweird.f32 %v628_v13 }
 0x393   :  { %v701_v34 = vpop.eup %700 }
 0x394   :  { %v630_v35 = vmul.f32 %v701_v34, %v628_v13  ;;  %vm636_vm4 = vweird.f32 %v701_v34 }
 0x395   :  { %vm637_vm6 = vmor %vm635_vm5, %vm636_vm4 }
 0x396   :  { %v631_v36 = vmul.f32 %v701_v34, %v630_v35 }
 0x398   :  { %v632_v2 = vmul.f32 0.5, %v631_v36 }
 0x39a   :  { %v633_v3 = vsub.f32 1.5, %v632_v2 }
 0x39c   :  { %v634_v37 = vmul.f32 %v701_v34, %v633_v3 }
 0x39e   :  { %v638_v40 = vsel %vm637_vm6, %v701_v34, %v634_v37 }
 0x39f   :  { %v640_v41 = vmul.f32 %v639_v38, %v638_v40 }
 0x3a1   :  { %v644_v43 = vperm.slane %v640_v41, 0 }
 0x3a3   :  { %v645_v44 = vmul.f32 %v644_v43, %v642_v42  ;;  %v646_v45 = vmul.f32 %v644_v43, %v643_v15 }
 0x3a5   :  { %v651_v46 = vadd.f32 %v697_v16, %v645_v44  ;;  %v652_v47 = vadd.f32 %v697_v16, %v646_v45 }
 0x3a7   :  { %v653_v48 = vadd.f32 %v651_v46, %v944_v1  ;;  %v654_v49 = vadd.f32 %v652_v47, %v942_v0 }
 0x3a9   :  { %v655_v50 = vmax.f32 %v653_v48, 0.0  ;;  %v656_v51 = vmax.f32 %v654_v49, 0.0 }
 0x3ab   :  { %657 = vst [vmem:[#allocation11] sm:$0xff] %v655_v50 }
 0x3ac   :  { %658 = vst [vmem:[#allocation11 + $0x8] sm:$0xff] %v656_v51 }
 0x3ad   :  { %671 = dma.vmem_to_hbm [thread:$0]  %s664_s16, 256, %s666_s21, [#allocation4], %s855_s17, %s855_s17, %s856_s18  }
 0x3ae   :  { %852 = dma.done.wait [#allocation4], 256  }
 0x3af   :  { %853 = vsyncadd [#allocation4], 4294967040 }
 0x3b0   :  { %676 = vsyncpa [#allocation3], 1 }
 0x3b1   :  { %677 = vsyncpa [#allocation6], 1 }
 0x3b2   :  { %678 = vsyncpa [#allocation9], 1 }
 0x3b3   :  { %679 = vsyncpa [#allocation4], 1 }

</bundles_post_ra>
